<compile_context>
chip_gen: v7x
topology: tpu7x:2x2x1
jax: 0.10.0
libtpu: 0.0.40
codegen_flags: <defaults>
</compile_context>

<pallas_src>
import jax
import jax.numpy as jnp
from jax.experimental import pallas as pl
from jax.experimental.pallas import tpu as pltpu


def _round_up(n, m):
    return ((n + m - 1) // m) * m


# ----------------------------- kernels -------------------------------------


def mlp_resident_kernel(x_ref, w1_ref, b1_ref, w2_ref, b2_ref, o_ref):
    # Both weight matrices VMEM-resident; two MXU matmuls with f32 accumulation,
    # bias + ReLU epilogues in f32.
    h = jnp.dot(x_ref[...], w1_ref[...], preferred_element_type=jnp.float32)
    h = jnp.maximum(h + b1_ref[...], 0.0)                      # (TB, hid_p) f32
    y = jnp.dot(h.astype(w2_ref.dtype), w2_ref[...],
                preferred_element_type=jnp.float32)
    o_ref[...] = jnp.maximum(y + b2_ref[...], 0.0).astype(o_ref.dtype)


def mlp_chunked_kernel(x_ref, w1_ref, b1_ref, w2_ref, b2_ref, o_ref, acc_ref):
    # hid is tiled along the last ("arbitrary") grid axis.  ReLU is elementwise
    # per hidden unit, so per-chunk ReLU + accumulation into a TBxout_p f32
    # scratch is exact.
    k = pl.program_id(1)

    @pl.when(k == 0)
    def _():
        acc_ref[...] = jnp.zeros_like(acc_ref)

    h = jnp.dot(x_ref[...], w1_ref[...], preferred_element_type=jnp.float32)
    h = jnp.maximum(h + b1_ref[...], 0.0)                      # (TB, TH) f32
    acc_ref[...] += jnp.dot(h.astype(w2_ref.dtype), w2_ref[...],
                            preferred_element_type=jnp.float32)

    @pl.when(k == pl.num_programs(1) - 1)
    def _():
        o_ref[...] = jnp.maximum(acc_ref[...] + b2_ref[...], 0.0).astype(o_ref.dtype)


# --------------------------- host wrappers ----------------------------------


def prepare_params(w1, b1, w2, b2):
    """Pad (lane-dense, multiples of 128) and cast the weights ONCE.

    Do this at init time, not per forward call, so the pad/cast HBM passes
    are not repeated on every step.
    """
    in_dim, hid = w1.shape
    out = w2.shape[1]
    in_p = _round_up(in_dim, 128)
    hid_p = _round_up(hid, 128)
    out_p = _round_up(out, 128)
    bf16, f32 = jnp.bfloat16, jnp.float32

    w1_p = jnp.zeros((in_p, hid_p), bf16).at[:in_dim, :hid].set(w1.astype(bf16))
    b1_p = jnp.zeros((1, hid_p), f32).at[0, :hid].set(b1.astype(f32))
    w2_p = jnp.zeros((hid_p, out_p), bf16).at[:hid, :out].set(w2.astype(bf16))
    b2_p = jnp.zeros((1, out_p), f32).at[0, :out].set(b2.astype(f32))
    return {"w1": w1_p, "b1": b1_p, "w2": w2_p, "b2": b2_p,
            "in_dim": in_dim, "hid": hid, "out": out}


def mlp_forward(x, params, *, block_batch=512, out_dtype=jnp.float32,
                force_chunked=False, vmem_budget_bytes=48 * 2**20):
    """x: (B, in_dim) float; params: output of prepare_params."""
    w1_p, b1_p, w2_p, b2_p = params["w1"], params["b1"], params["w2"], params["b2"]
    in_dim, hid, out = params["in_dim"], params["hid"], params["out"]
    in_p, hid_p = w1_p.shape
    out_p = w2_p.shape[1]
    out_bytes = jnp.dtype(out_dtype).itemsize

    B = x.shape[0]
    bf16 = jnp.bfloat16

    # ---- plan the tiling (static, per-shape) --------------------------------
    # Batch tile: multiple of 16 (bf16 packs two rows per sublane).
    TB = min(block_batch, _round_up(B, 16))
    # Guarantee >= 2 batch grid steps when B allows it, so the "parallel"
    # batch axis can actually shard across v7x's two TensorCores.
    if B > 16 and _round_up(B, TB) // TB < 2:
        TB = max(16, _round_up((B + 1) // 2, 16))

    def resident_bytes(tb):
        # weights/biases single-buffered (Buffered(1)), x/o double-buffered,
        # f32 h + its bf16 copy ~6 B/elem of live pressure.
        weights = (in_p * hid_p + hid_p * out_p) * 2 + (hid_p + out_p) * 4
        return (weights + 2 * tb * in_p * 2 + 2 * tb * out_p * out_bytes
                + tb * hid_p * 6)

    def chunked_bytes(tb, th):
        weights = 2 * (in_p * th + th * out_p) * 2 + 2 * th * 4 + out_p * 4
        return (weights + 2 * tb * in_p * 2 + 2 * tb * out_p * out_bytes
                + tb * out_p * 4 + tb * th * 6)

    tb = TB
    while tb > 16 and resident_bytes(tb) > vmem_budget_bytes:
        tb = max(16, _round_up(tb // 2, 16))
    use_chunked = force_chunked or resident_bytes(tb) > vmem_budget_bytes

    if use_chunked:
        # Hid tile: largest multiple of 128 dividing hid_p that fits the budget.
        m = hid_p // 128
        TH = 128
        for d in sorted((d for d in range(1, m + 1) if m % d == 0), reverse=True):
            if chunked_bytes(TB, d * 128) <= vmem_budget_bytes:
                TH = d * 128
                break
        tb = TB
        while tb > 16 and chunked_bytes(tb, TH) > vmem_budget_bytes:
            tb = max(16, _round_up(tb // 2, 16))
        footprint = chunked_bytes(tb, TH)
    else:
        TH = hid_p
        footprint = resident_bytes(tb)

    TB = tb
    B_p = _round_up(B, TB)
    vmem_limit = int(min(max(footprint * 1.3, 32 * 2**20), 64 * 2**20))

    # ---- pad / cast the input (skip the copy when already aligned) ----------
    if B_p == B and in_p == in_dim:
        x_p = x.astype(bf16)
    else:
        x_p = jnp.zeros((B_p, in_p), bf16).at[:B, :in_dim].set(x.astype(bf16))

    flops = 2 * B_p * (in_p * hid_p + hid_p * out_p)
    bytes_accessed = (x_p.size * 2 + w1_p.size * 2 + w2_p.size * 2
                      + b1_p.size * 4 + b2_p.size * 4 + B_p * out_p * out_bytes)
    cost = pl.CostEstimate(flops=flops, transcendentals=0,
                           bytes_accessed=bytes_accessed)

    if not use_chunked:
        y_pad = pl.pallas_call(
            mlp_resident_kernel,
            out_shape=jax.ShapeDtypeStruct((B_p, out_p), out_dtype),
            grid=(B_p // TB,),
            in_specs=[
                # x tile streams (double-buffered by default).
                pl.BlockSpec((TB, in_p), lambda i: (i, 0)),
                # Resident operands: constant index_map -> single buffer.
                pl.BlockSpec((in_p, hid_p), lambda i: (0, 0),
                             pipeline_mode=pl.Buffered(1)),
                pl.BlockSpec((1, hid_p), lambda i: (0, 0),
                             pipeline_mode=pl.Buffered(1)),
                pl.BlockSpec((hid_p, out_p), lambda i: (0, 0),
                             pipeline_mode=pl.Buffered(1)),
                pl.BlockSpec((1, out_p), lambda i: (0, 0),
                             pipeline_mode=pl.Buffered(1)),
            ],
            out_specs=pl.BlockSpec((TB, out_p), lambda i: (i, 0)),
            compiler_params=pltpu.CompilerParams(
                dimension_semantics=("parallel",),
                vmem_limit_bytes=vmem_limit),
            cost_estimate=cost,
        )(x_p, w1_p, b1_p, w2_p, b2_p)
    else:
        nk = hid_p // TH
        y_pad = pl.pallas_call(
            mlp_chunked_kernel,
            out_shape=jax.ShapeDtypeStruct((B_p, out_p), out_dtype),
            grid=(B_p // TB, nk),
            in_specs=[
                pl.BlockSpec((TB, in_p), lambda i, k: (i, 0)),   # same block over k
                pl.BlockSpec((in_p, TH), lambda i, k: (0, k)),   # W1 column chunk
                pl.BlockSpec((1, TH), lambda i, k: (0, k)),      # b1 chunk
                pl.BlockSpec((TH, out_p), lambda i, k: (k, 0)),  # W2 row chunk
                pl.BlockSpec((1, out_p), lambda i, k: (0, 0),
                             pipeline_mode=pl.Buffered(1)),      # b2 resident
            ],
            out_specs=pl.BlockSpec((TB, out_p), lambda i, k: (i, 0)),
            scratch_shapes=[pltpu.VMEM((TB, out_p), jnp.float32)],
            compiler_params=pltpu.CompilerParams(
                dimension_semantics=("parallel", "arbitrary"),
                vmem_limit_bytes=vmem_limit),
            cost_estimate=cost,
        )(x_p, w1_p, b1_p, w2_p, b2_p)

    return y_pad[:B, :out]


# ------------------------------ helpers -------------------------------------


def init_params(key, in_dim, hid, out, dtype=jnp.float32):
    # Deterministic init mimicking nn.Linear default (uniform +/- 1/sqrt(fan_in)).
    k1, k2, k3, k4 = jax.random.split(key, 4)
    bound1 = 1.0 / jnp.sqrt(in_dim)
    bound2 = 1.0 / jnp.sqrt(hid)
    w1 = jax.random.uniform(k1, (in_dim, hid), dtype, -bound1, bound1)
    b1 = jax.random.uniform(k2, (hid,), dtype, -bound1, bound1)
    w2 = jax.random.uniform(k3, (hid, out), dtype, -bound2, bound2)
    b2 = jax.random.uniform(k4, (out,), dtype, -bound2, bound2)
    return w1, b1, w2, b2


def mlp_ref(x, w1, b1, w2, b2):
    h = jnp.maximum(x @ w1 + b1, 0.0)
    return jnp.maximum(h @ w2 + b2, 0.0)


if __name__ == "__main__":
    key = jax.random.PRNGKey(0)
    kx, kp, kx2 = jax.random.split(key, 3)

    in_dim, hid, out = 32, 64, 16
    w1, b1, w2, b2 = init_params(kp, in_dim, hid, out)
    params = prepare_params(w1, b1, w2, b2)   # pad/cast once, outside forward

    # Reference on bf16-rounded operands (kernel feeds the MXU bf16 with f32
    # accumulation, so this should agree tightly).
    w1b = w1.astype(jnp.bfloat16).astype(jnp.float32)
    w2b = w2.astype(jnp.bfloat16).astype(jnp.float32)

    # 1) Resident-weights path, small batch.
    B = 8
    x = jax.random.normal(kx, (B, in_dim), jnp.float32)
    y = jax.block_until_ready(mlp_forward(x, params))
    xb = x.astype(jnp.bfloat16).astype(jnp.float32)
    y_ref = mlp_ref(xb, w1b, b1, w2b, b2)
    assert y.shape == (B, out)
    assert jnp.allclose(y, y_ref, atol=2e-3, rtol=2e-3)

    # 2) Hid-chunked accumulation path, batch split over >=2 grid steps.
    B2 = 40
    x2 = jax.random.normal(kx2, (B2, in_dim), jnp.float32)
    y2 = jax.block_until_ready(mlp_forward(x2, params, force_chunked=True))
    x2b = x2.astype(jnp.bfloat16).astype(jnp.float32)
    y2_ref = mlp_ref(x2b, w1b, b1, w2b, b2)
    assert y2.shape == (B2, out)
    assert jnp.allclose(y2, y2_ref, atol=2e-3, rtol=2e-3)

    print("KERNEL_OK")
</pallas_src>

<mosaic_0001>
module attributes {stable_mosaic.version = 11 : i64} {
  func.func @mlp_resident_kernel(%arg0: i32, %arg1: memref<16x128xbf16, #tpu.memory_space<vmem>>, %arg2: memref<128x128xbf16, #tpu.memory_space<vmem>>, %arg3: memref<1x128xf32, #tpu.memory_space<vmem>>, %arg4: memref<128x128xbf16, #tpu.memory_space<vmem>>, %arg5: memref<1x128xf32, #tpu.memory_space<vmem>>, %arg6: memref<16x128xf32, #tpu.memory_space<vmem>>) attributes {dimension_semantics = [#tpu.dimension_semantics<parallel>], iteration_bounds = array<i64: 1>, scalar_prefetch = 0 : i64, scratch_operands = 0 : i64, tpu.core_type = #tpu.core_type<tc>, window_params = [{transform_indices = @transform_0, window_bounds = array<i64: 16, 128>}, {pipeline_mode = #tpu.pipeline_mode<synchronous>, transform_indices = @transform_1, window_bounds = array<i64: 128, 128>}, {pipeline_mode = #tpu.pipeline_mode<synchronous>, transform_indices = @transform_2, window_bounds = array<i64: 1, 128>}, {pipeline_mode = #tpu.pipeline_mode<synchronous>, transform_indices = @transform_3, window_bounds = array<i64: 128, 128>}, {pipeline_mode = #tpu.pipeline_mode<synchronous>, transform_indices = @transform_4, window_bounds = array<i64: 1, 128>}, {transform_indices = @transform_5, window_bounds = array<i64: 16, 128>}]} {
    %c0 = arith.constant 0 : index
    %c0_0 = arith.constant 0 : index
    %0 = vector.load %arg1[%c0, %c0_0] : memref<16x128xbf16, #tpu.memory_space<vmem>>, vector<16x128xbf16>
    %c0_1 = arith.constant 0 : index
    %c0_2 = arith.constant 0 : index
    %1 = vector.load %arg2[%c0_1, %c0_2] : memref<128x128xbf16, #tpu.memory_space<vmem>>, vector<128x128xbf16>
    %cst = arith.constant dense<0.000000e+00> : vector<16x128xf32>
    %2 = tpu.matmul %0, %1, %cst {dimension_numbers = #tpu.dot_dimension_numbers<[1], [0], [0], [1], [0, 0, 1, 1], [], []>} : vector<16x128xbf16>, vector<128x128xbf16>, vector<16x128xf32> -> vector<16x128xf32>
    %c0_3 = arith.constant 0 : index
    %c0_4 = arith.constant 0 : index
    %3 = vector.load %arg3[%c0_3, %c0_4] : memref<1x128xf32, #tpu.memory_space<vmem>>, vector<1x128xf32>
    %4 = vector.broadcast %3 : vector<1x128xf32> to vector<16x128xf32>
    %5 = arith.addf %2, %4 : vector<16x128xf32>
    %cst_5 = arith.constant 0.000000e+00 : f32
    %6 = vector.broadcast %cst_5 : f32 to vector<16x128xf32>
    %7 = arith.maximumf %5, %6 : vector<16x128xf32>
    %8 = arith.truncf %7 : vector<16x128xf32> to vector<16x128xbf16>
    %c0_6 = arith.constant 0 : index
    %c0_7 = arith.constant 0 : index
    %9 = vector.load %arg4[%c0_6, %c0_7] : memref<128x128xbf16, #tpu.memory_space<vmem>>, vector<128x128xbf16>
    %cst_8 = arith.constant dense<0.000000e+00> : vector<16x128xf32>
    %10 = tpu.matmul %8, %9, %cst_8 {dimension_numbers = #tpu.dot_dimension_numbers<[1], [0], [0], [1], [0, 0, 1, 1], [], []>} : vector<16x128xbf16>, vector<128x128xbf16>, vector<16x128xf32> -> vector<16x128xf32>
    %c0_9 = arith.constant 0 : index
    %c0_10 = arith.constant 0 : index
    %11 = vector.load %arg5[%c0_9, %c0_10] : memref<1x128xf32, #tpu.memory_space<vmem>>, vector<1x128xf32>
    %12 = vector.broadcast %11 : vector<1x128xf32> to vector<16x128xf32>
    %13 = arith.addf %10, %12 : vector<16x128xf32>
    %cst_11 = arith.constant 0.000000e+00 : f32
    %14 = vector.broadcast %cst_11 : f32 to vector<16x128xf32>
    %15 = arith.maximumf %13, %14 : vector<16x128xf32>
    %c0_12 = arith.constant 0 : index
    %c0_13 = arith.constant 0 : index
    %16 = vector.load %arg6[%c0_12, %c0_13] : memref<16x128xf32, #tpu.memory_space<vmem>>, vector<16x128xf32>
    tpu.vector_store %arg6[%c0_12, %c0_13], %15 {strides = array<i32>} : memref<16x128xf32, #tpu.memory_space<vmem>>, vector<16x128xf32>,
    return
  }
  func.func @transform_0(%arg0: i32) -> (i32, i32) {
    %c0_i32 = arith.constant 0 : i32
    %c0_i32_0 = arith.constant 0 : i32
    return %arg0, %c0_i32 : i32, i32
  }
  func.func @transform_1(%arg0: i32) -> (i32, i32) {
    %c0_i32 = arith.constant 0 : i32
    %c0_i32_0 = arith.constant 0 : i32
    %c0_i32_1 = arith.constant 0 : i32
    return %c0_i32, %c0_i32_0 : i32, i32
  }
  func.func @transform_2(%arg0: i32) -> (i32, i32) {
    %c0_i32 = arith.constant 0 : i32
    %c0_i32_0 = arith.constant 0 : i32
    %c0_i32_1 = arith.constant 0 : i32
    return %c0_i32, %c0_i32_0 : i32, i32
  }
  func.func @transform_3(%arg0: i32) -> (i32, i32) {
    %c0_i32 = arith.constant 0 : i32
    %c0_i32_0 = arith.constant 0 : i32
    %c0_i32_1 = arith.constant 0 : i32
    return %c0_i32, %c0_i32_0 : i32, i32
  }
  func.func @transform_4(%arg0: i32) -> (i32, i32) {
    %c0_i32 = arith.constant 0 : i32
    %c0_i32_0 = arith.constant 0 : i32
    %c0_i32_1 = arith.constant 0 : i32
    return %c0_i32, %c0_i32_0 : i32, i32
  }
  func.func @transform_5(%arg0: i32) -> (i32, i32) {
    %c0_i32 = arith.constant 0 : i32
    %c0_i32_0 = arith.constant 0 : i32
    return %arg0, %c0_i32 : i32, i32
  }
}

</mosaic_0001>

<bundles_post_ra>
// kernel: tpu_custom_call.1
= control target key start
LH: loop header
LB: loop body
LE: loop exit
PB: predicated region body
PF: predicated region fallthrough
CT: control target
= control target key end

     0   :  { %10 = vsyncpa [#allocation3], 0  ;;  %s628_s0 = inlined_call_operand.hbm [shape: bf16[16,128], index: 0, kind: input, shape index: {}]   ;;  %s629_s1 = inlined_call_operand.hbm [shape: bf16[128,128], index: 1, kind: input, shape index: {}]   ;;  %s630_s2 = inlined_call_operand.vmem [shape: f32[1,128], index: 2, kind: input, shape index: {}]   ;;  %s631_s3 = inlined_call_operand.hbm [shape: bf16[128,128], index: 3, kind: input, shape index: {}]   ;;  %s632_s4 = inlined_call_operand.vmem [shape: f32[1,128], index: 4, kind: input, shape index: {}]   ;;  %s633_s5 = inlined_call_operand.hbm [shape: f32[16,128], index: 5, kind: output, shape index: {}]  }
   0x1   :  { %11 = vsyncpa [#allocation6], 0 }
   0x2   :  { %12 = vsyncpa [#allocation4], 0  ;;  %s518_s18 = smov [#allocation5]   ;;  %s519_s20 = smov [#allocation2]  }
   0x3   :  { %s30_s19 = sshll.u32 %s518_s18, 4  ;;  %s18_s21 = sshll.u32 %s519_s20, 4  ;;  %s31_s19 = int_to_ptr.vmem [resolvable:$true] %s30_s19  ;;  %s558_s21 = int_to_ptr.vmem [resolvable:$true] %s18_s21 }
   0x4   :  { %s424_s24 = scalar_lea.hbm %s629_s1, 1024 }
   0x5   :  { %p425_p0 = scmp.ne.s32.totalorder %s629_s1, %s424_s24  ;;  %p428_p1 = scmp.lt.u32.totalorder %s424_s24, %s629_s1 }
   0x7   :  { %p430_p2 = pnand %p428_p1, %p425_p0 }
   0x9   :  { %433 = shalt.err (!%p430_p2)
}
   0xa   :  { %s434_s29 = scalar_lea.vmem %s31_s19, 1024  ;;  %p439_p4 = scmp.lt.s32.totalorder %s31_s19, %s31_s19 }
   0xb   :  { %p435_p3 = scmp.ne.s32.totalorder %s31_s19, %s434_s29  ;;  %p440_p5 = scmp.lt.s32.totalorder %s434_s29, %s434_s29 }
   0xd   :  { %p441_p6 = por %p440_p5, %p439_p4 }
   0xf   :  { %p442_p7 = pnand %p441_p6, %p435_p3 }
  0x11   :  { %445 = shalt.err (!%p442_p7)
}
  0x12   :  { %s520_s30 = smov 64   ;;  %s521_s6 = smov 4  }
  0x13   :  { %36 = dma.hbm_to_vmem [thread:$0]  %s629_s1, 1024, %s31_s19, [#allocation6], %s520_s30, %s520_s30, %s521_s6  }
  0x14   :  { %s446_s11 = scalar_lea.hbm %s628_s0, 128 }
  0x15   :  { %p447_p8 = scmp.ne.s32.totalorder %s628_s0, %s446_s11  ;;  %p450_p9 = scmp.lt.u32.totalorder %s446_s11, %s628_s0 }
  0x17   :  { %p452_p10 = pnand %p450_p9, %p447_p8 }
  0x19   :  { %455 = shalt.err (!%p452_p10)
}
  0x1a   :  { %s456_s16 = scalar_lea.vmem %s558_s21, 128  ;;  %p461_p12 = scmp.lt.s32.totalorder %s558_s21, %s558_s21 }
  0x1b   :  { %p457_p11 = scmp.ne.s32.totalorder %s558_s21, %s456_s16  ;;  %p462_p13 = scmp.lt.s32.totalorder %s456_s16, %s456_s16 }
  0x1d   :  { %p463_p0 = por %p462_p13, %p461_p12 }
  0x1f   :  { %p464_p1 = pnand %p463_p0, %p457_p11 }
  0x21   :  { %467 = shalt.err (!%p464_p1)
}
  0x22   :  { %24 = dma.hbm_to_vmem [thread:$0]  %s628_s0, 128, %s558_s21, [#allocation3], %s520_s30, %s520_s30, %s521_s6  }
  0x23   :  { %s522_s18 = smov [#allocation7]   ;;  %s468_s23 = scalar_lea.hbm %s631_s3, 1024 }
  0x24   :  { %s44_s19 = sshll.u32 %s522_s18, 4  ;;  %p469_p2 = scmp.ne.s32.totalorder %s631_s3, %s468_s23  ;;  %s45_s19 = int_to_ptr.vmem [resolvable:$true] %s44_s19 }
  0x25   :  { %p472_p3 = scmp.lt.u32.totalorder %s468_s23, %s631_s3 }
  0x27   :  { %p474_p4 = pnand %p472_p3, %p469_p2 }
  0x29   :  { %477 = shalt.err (!%p474_p4)
}
  0x2a   :  { %s478_s28 = scalar_lea.vmem %s45_s19, 1024  ;;  %p483_p6 = scmp.lt.s32.totalorder %s45_s19, %s45_s19 }
  0x2b   :  { %p479_p5 = scmp.ne.s32.totalorder %s45_s19, %s478_s28  ;;  %p484_p7 = scmp.lt.s32.totalorder %s478_s28, %s478_s28 }
  0x2d   :  { %p485_p8 = por %p484_p7, %p483_p6 }
  0x2f   :  { %p486_p9 = pnand %p485_p8, %p479_p5 }
  0x31   :  { %489 = shalt.err (!%p486_p9)
}
  0x32   :  { %50 = dma.hbm_to_vmem [thread:$0]  %s631_s3, 1024, %s45_s19, [#allocation6], %s520_s30, %s520_s30, %s521_s6  }
  0x33   :  { %512 = dma.done.wait [#allocation3], 128  }
  0x34   :  { %513 = vsyncadd [#allocation3], 4294967168 }
  0x35   :  { %514 = dma.done.wait [#allocation6], 2048  }
  0x36   :  { %515 = vsyncadd [#allocation6], 4294965248  ;;  %v523_v0 = vmov 0.0   ;;  %vm524_vm0 = vmmov 0   ;;  %v407_v1 = vld [vmem:[#allocation5] sm:$0xff]   ;;  %v408_v2 = vld [vmem:[#allocation5 + $0x8] sm:$0xff]  }
  0x37   :  { %357 = vmatprep.subr.bf16.mxu0 %v523_v0  ;;  %373 = vmatprep.mubr.msk.bf16.mxu0 %vm524_vm0, %v523_v0  ;;  %v409_v3 = vld [vmem:[#allocation5 + $0x10] sm:$0xff]   ;;  %v416_v4 = vld [vmem:[#allocation7] sm:$0xff]   ;;  %v410_v5 = vld [vmem:[#allocation5 + $0x18] sm:$0xff]   ;;  %s525_s7 = smov [#allocation8]  }
  0x38   :  { %377 = vmatprep.subr.bf16.mxu1 %v523_v0  ;;  %393 = vmatprep.mubr.msk.bf16.mxu1 %vm524_vm0, %v523_v0  ;;  %v417_v6 = vld [vmem:[#allocation7 + $0x8] sm:$0xff]   ;;  %v411_v7 = vld [vmem:[#allocation5 + $0x20] sm:$0xff]   ;;  %v418_v8 = vld [vmem:[#allocation7 + $0x10] sm:$0xff]   ;;  %s307_s8 = sshll.u32 %s525_s7, 4  ;;  %s308_s8 = int_to_ptr.vmem [resolvable:$true] %s307_s8 }
  0x39   :  { %358 = vmatpush3.bf16.msra.mxu0 %v407_v1  ;;  %378 = vmatpush3.bf16.msra.mxu1 %v416_v4  ;;  %v412_v9 = vld [vmem:[#allocation5 + $0x28] sm:$0xff]   ;;  %v419_v10 = vld [vmem:[#allocation7 + $0x18] sm:$0xff]   ;;  %v413_v11 = vld [vmem:[#allocation5 + $0x30] sm:$0xff]   ;;  %p495_p11 = scmp.lt.s32.totalorder %s308_s8, %s308_s8 }
  0x3a   :  { %359 = vmatprep.subr.bf16.mxu0 %v523_v0  ;;  %379 = vmatprep.subr.bf16.mxu1 %v523_v0  ;;  %v420_v12 = vld [vmem:[#allocation7 + $0x20] sm:$0xff]   ;;  %v414_v13 = vld [vmem:[#allocation5 + $0x38] sm:$0xff]   ;;  %v421_v14 = vld [vmem:[#allocation7 + $0x28] sm:$0xff]  }
  0x3b   :  { %v415_v15 = vld [vmem:[#allocation2] sm:$0xff]   ;;  %v422_v16 = vld [vmem:[#allocation7 + $0x30] sm:$0xff]  }
  0x3c   :  { %v423_v17 = vld [vmem:[#allocation7 + $0x38] sm:$0xff]  }
  0x3d   :  { %360 = vmatpush3.bf16.msra.mxu0 %v408_v2  ;;  %380 = vmatpush3.bf16.msra.mxu1 %v417_v6  ;;  %v320_v18 = vld [vmem:[%s630_s2] ss:$0 sm:$0xff]  ;;  %s490_s2 = scalar_lea.vmem %s308_s8, 256 }
  0x3e   :  { %361 = vmatprep.subr.bf16.mxu0 %v523_v0  ;;  %381 = vmatprep.subr.bf16.mxu1 %v523_v0  ;;  %v330_v28 = vld [vmem:[%s632_s4] ss:$0 sm:$0xff]  ;;  %p491_p10 = scmp.ne.s32.totalorder %s308_s8, %s490_s2  ;;  %p496_p12 = scmp.lt.s32.totalorder %s490_s2, %s490_s2 }
  0x40   :  { %p497_p13 = por %p496_p12, %p495_p11 }
  0x41   :  { %362 = vmatpush3.bf16.msra.mxu0 %v409_v3  ;;  %382 = vmatpush3.bf16.msra.mxu1 %v418_v8 }
  0x42   :  { %363 = vmatprep.subr.bf16.mxu0 %v523_v0  ;;  %383 = vmatprep.subr.bf16.mxu1 %v523_v0  ;;  %p498_p0 = pnand %p497_p13, %p491_p10 }
  0x45   :  { %364 = vmatpush3.bf16.msra.mxu0 %v410_v5  ;;  %384 = vmatpush3.bf16.msra.mxu1 %v419_v10 }
  0x46   :  { %365 = vmatprep.subr.bf16.mxu0 %v523_v0  ;;  %385 = vmatprep.subr.bf16.mxu1 %v523_v0 }
  0x49   :  { %366 = vmatpush3.bf16.msra.mxu0 %v411_v7  ;;  %386 = vmatpush3.bf16.msra.mxu1 %v420_v12 }
  0x4a   :  { %367 = vmatprep.subr.bf16.mxu0 %v523_v0  ;;  %387 = vmatprep.subr.bf16.mxu1 %v523_v0 }
  0x4d   :  { %368 = vmatpush3.bf16.msra.mxu0 %v412_v9  ;;  %388 = vmatpush3.bf16.msra.mxu1 %v421_v14 }
  0x4e   :  { %369 = vmatprep.subr.bf16.mxu0 %v523_v0  ;;  %389 = vmatprep.subr.bf16.mxu1 %v523_v0 }
  0x51   :  { %370 = vmatpush3.bf16.msra.mxu0 %v413_v11  ;;  %390 = vmatpush3.bf16.msra.mxu1 %v422_v16 }
  0x52   :  { %371 = vmatprep.subr.bf16.mxu0 %v523_v0  ;;  %391 = vmatprep.subr.bf16.mxu1 %v523_v0 }
  0x55   :  { %372 = vmatpush3.bf16.msra.mxu0 %v414_v13  ;;  %392 = vmatpush3.bf16.msra.mxu1 %v423_v17 }
  0x58   :  { %374 = vmatmul.mubr.bf16.vlgmr.msra.gmra.mrb[0].mxu0 %v415_v15 }
 0x12b   :  { %v176_v19 = vpop.f32.mrb[0].mxu0 }
 0x12c   :  { %v177_v20 = vadd.f32 %v320_v18, %v176_v19  ;;  %v375_v21 = vpop.f32.mrb[1].mxu0 }
 0x12d   :  { %v179_v22 = vpop.f32.mrb[2].mxu0 }
 0x12e   :  { %v180_v23 = vadd.f32 %v320_v18, %v179_v22  ;;  %v376_v24 = vpop.f32.mrb[3].mxu0  ;;  %v183_v25 = vmax.f32 %v177_v20, 0.0 }
 0x130   :  { %v184_v26 = vmax.f32 %v180_v23, 0.0 }
 0x132   :  { %v185_v27 = vpack.c.bf16 %v184_v26, %v183_v25 }
 0x134   :  { %394 = vmatmul.mubr.bf16.vlgmr.msra.gmra.mrb[0].mxu1 %v185_v27 }
 0x207   :  { %v291_v29 = vpop.f32.mrb[0].mxu1 }
 0x208   :  { %v292_v30 = vadd.f32 %v330_v28, %v291_v29  ;;  %v395_v31 = vpop.f32.mrb[1].mxu1 }
 0x209   :  { %v294_v32 = vpop.f32.mrb[2].mxu1 }
 0x20a   :  { %v298_v33 = vmax.f32 %v292_v30, 0.0  ;;  %v295_v34 = vadd.f32 %v330_v28, %v294_v32  ;;  %v396_v35 = vpop.f32.mrb[3].mxu1 }
 0x20c   :  { %300 = vst [vmem:[#allocation8] sm:$0xff] %v298_v33  ;;  %v299_v36 = vmax.f32 %v295_v34, 0.0 }
 0x20e   :  { %301 = vst [vmem:[#allocation8 + $0x8] sm:$0xff] %v299_v36 }
 0x20f   :  { %501 = shalt.err (!%p498_p0)
}
 0x210   :  { %s502_s10 = scalar_lea.hbm %s633_s5, 256 }
 0x211   :  { %p503_p1 = scmp.ne.s32.totalorder %s633_s5, %s502_s10  ;;  %p506_p2 = scmp.lt.u32.totalorder %s502_s10, %s633_s5 }
 0x213   :  { %p508_p3 = pnand %p506_p2, %p503_p1 }
 0x215   :  { %511 = shalt.err (!%p508_p3)
}
 0x216   :  { %s526_s15 = smov 128   ;;  %s527_s16 = smov 8  }
 0x217   :  { %313 = dma.vmem_to_hbm [thread:$0]  %s308_s8, 256, %s633_s5, [#allocation4], %s526_s15, %s526_s15, %s527_s16  }
 0x218   :  { %516 = dma.done.wait [#allocation4], 256  }
 0x219   :  { %517 = vsyncadd [#allocation4], 4294967040 }
 0x21a   :  { %317 = vsyncpa [#allocation3], 1 }
 0x21b   :  { %318 = vsyncpa [#allocation6], 1 }
 0x21c   :  { %319 = vsyncpa [#allocation4], 1 }

</bundles_post_ra>
